<compile_context>
chip_gen: v7x
topology: tpu7x:2x2x1
jax: 0.10.0
libtpu: 0.0.40
codegen_flags: <defaults>
</compile_context>

<pallas_src>
import functools
import math

import jax
import jax.numpy as jnp
from jax.experimental import pallas as pl
from jax.experimental.pallas import tpu as pltpu

_LANE = 128        # lane (last) dim of every block / accumulator
_SUBLANE = 8       # f32 sublane granularity
_CHUNK_ROWS = 512  # rows per in-kernel sub-chunk (512*128*4B = 256 KiB/f32 temp)


def _round_up(x, m):
    return (x + m - 1) // m * m


def _chip_config():
    """Per-generation block size / scoped-VMEM limit / partition count."""
    cap = None
    try:
        cap = int(pltpu.get_tpu_info().vmem_capacity_bytes)
    except Exception:
        cap = None
    if cap is not None and cap <= 64 * 1024 * 1024:
        # v7x-like: 64 MiB VMEM per TensorCore, 2 TCs -> smaller blocks, P=2.
        # TODO(synk): verify in xprof that the leading "parallel" axis really
        # shards across both TensorCores; otherwise switch to CORE_PARALLEL.
        return {"block_bytes": 4 << 20, "vmem_limit": 40 << 20, "partitions": 2}
    if cap is not None:
        # v5e / v6e: 128 MiB VMEM, single TensorCore, HBM-bound.
        return {"block_bytes": 8 << 20, "vmem_limit": 64 << 20, "partitions": 1}
    # Unknown / query failed: conservative defaults safe on every generation.
    return {"block_bytes": 4 << 20, "vmem_limit": 32 << 20, "partitions": 1}


def _contrastive_loss_kernel(x_ref, t_ref, acc_ref, *, margin, chunk_rows,
                             n_chunks):
    i = pl.program_id(1)  # reduction axis within a partition

    # Output block index depends only on the partition axis, so acc_ref stays
    # resident in VMEM across the whole inner (reduction) axis.
    @pl.when(i == 0)
    def _():
        acc_ref[...] = jnp.zeros_like(acc_ref)

    def chunk_sum(c):
        start = c * chunk_rows
        if not isinstance(start, int):
            start = pl.multiple_of(start, chunk_rows)
        x = x_ref[pl.ds(start, chunk_rows), :].astype(jnp.float32)
        t = t_ref[pl.ds(start, chunk_rows), :].astype(jnp.float32)
        # sigmoid(x) == 0.5 * tanh(0.5 * x) + 0.5   (single EUP op)
        d = 0.5 * jnp.tanh(0.5 * x) + 0.5
        m = jnp.maximum(margin - d, 0.0)
        m2 = m * m
        # t*d^2 + (1-t)*m^2  ==  m^2 + t*(d^2 - m^2)   (fewer VALU ops/elem)
        loss = m2 + t * (d * d - m2)
        # vreg-shaped reduction: split the sublane-stacking (major) dim only
        # (layout-free reshape) -> pure VPU adds hidden under the DMA.
        return jnp.sum(
            loss.reshape(chunk_rows // _SUBLANE, _SUBLANE, _LANE), axis=0)

    if n_chunks == 1:
        acc_ref[...] += chunk_sum(0)
    else:
        # Sub-chunking bounds the VMEM held by the f32 elementwise temporaries
        # (otherwise multi-MiB blocks would materialize multi-MiB temps).
        def body(c, acc):
            return acc + chunk_sum(c)

        acc_ref[...] += jax.lax.fori_loop(
            0, n_chunks, body, jnp.zeros((_SUBLANE, _LANE), jnp.float32))


def contrastive_loss(output, target, margin=1.0):
    """Pallas equivalent of ContrastiveLoss(margin).forward(output, target)."""
    assert output.shape == target.shape
    n_true = math.prod(output.shape)
    assert n_true > 0

    cfg = _chip_config()
    itemsize = jnp.dtype(output.dtype).itemsize
    sub_q = max(_SUBLANE, 32 // max(1, itemsize))  # sublane quantum per dtype

    flat_o = output.reshape(-1)
    flat_t = target.reshape(-1)

    # ---- layout: free reshape when lane-aligned, neutral pad otherwise -----
    if n_true % _LANE == 0:
        n_lay = n_true                              # zero-copy 2-D view
    else:
        # TODO(synk): for very large lane-ragged inputs this pad is one extra
        # HBM pass; a manual-DMA (pl.ANY) path would remove it.
        n_lay = _round_up(n_true, sub_q * _LANE)
        pad = n_lay - n_true
        # Neutral padding: sigmoid(-1e4) == 0 and target == 1 -> the padded
        # elements contribute exactly 0, so no in-kernel mask is needed.
        flat_o = jnp.pad(flat_o, (0, pad), constant_values=-1e4)
        flat_t = jnp.pad(flat_t, (0, pad), constant_values=1.0)
    rows = n_lay // _LANE
    o2d = flat_o.reshape(rows, _LANE)
    t2d = flat_t.reshape(rows, _LANE)

    # ---- block sizing (chip + dtype aware) ----------------------------------
    tile_target = cfg["block_bytes"] // (itemsize * _LANE)
    tile_target = max(_CHUNK_ROWS, tile_target // _CHUNK_ROWS * _CHUNK_ROWS)

    rows_usable = rows // sub_q * sub_q
    tile_rows = min(tile_target, rows_usable)
    if tile_rows >= _CHUNK_ROWS:
        tile_rows = tile_rows // _CHUNK_ROWS * _CHUNK_ROWS
    chunk_rows = min(_CHUNK_ROWS, tile_rows) if tile_rows > 0 else 0

    kernel_sum = jnp.float32(0.0)
    main_rows = 0
    if tile_rows >= _SUBLANE:
        num_blocks = rows // tile_rows
        P = max(1, min(cfg["partitions"], num_blocks))
        num_blocks = (num_blocks // P) * P          # round DOWN: no pad blocks
        blocks_per_part = num_blocks // P
        main_rows = num_blocks * tile_rows

        kernel = functools.partial(
            _contrastive_loss_kernel,
            margin=float(margin),
            chunk_rows=chunk_rows,
            n_chunks=tile_rows // chunk_rows,
        )
        partials = pl.pallas_call(
            kernel,
            out_shape=jax.ShapeDtypeStruct((P, _SUBLANE, _LANE), jnp.float32),
            grid_spec=pltpu.PrefetchScalarGridSpec(
                num_scalar_prefetch=0,
                grid=(P, blocks_per_part),
                in_specs=[
                    pl.BlockSpec((tile_rows, _LANE),
                                 lambda p, i: (p * blocks_per_part + i, 0)),
                    pl.BlockSpec((tile_rows, _LANE),
                                 lambda p, i: (p * blocks_per_part + i, 0)),
                ],
                out_specs=pl.BlockSpec((None, _SUBLANE, _LANE),
                                       lambda p, i: (p, 0, 0)),
            ),
            compiler_params=pltpu.CompilerParams(
                dimension_semantics=("parallel", "arbitrary"),
                vmem_limit_bytes=cfg["vmem_limit"],
            ),
        )(o2d, t2d)
        kernel_sum = jnp.sum(partials)

    # ---- tail: leftover (< P blocks) elements, one fused jnp pass -----------
    tail_sum = jnp.float32(0.0)
    main_elems = main_rows * _LANE
    if main_elems < n_lay:
        to = flat_o[main_elems:].astype(jnp.float32)
        tt = flat_t[main_elems:].astype(jnp.float32)
        d = jax.nn.sigmoid(to)
        m = jnp.maximum(margin - d, 0.0)
        tail_sum = jnp.sum(tt * d * d + (1.0 - tt) * m * m)

    # Exact mean over the TRUE element count (padding contributes 0 to sums).
    return (kernel_sum + tail_sum) / n_true


def _reference(output, target, margin=1.0):
    d = jax.nn.sigmoid(output)
    return jnp.mean(
        target * d ** 2 + (1.0 - target) * jnp.maximum(margin - d, 0.0) ** 2)


if __name__ == "__main__":
    key = jax.random.PRNGKey(0)
    k1, k2, k3, k4 = jax.random.split(key, 4)

    # Case 1: lane-aligned input (2048 elements) -> zero-copy kernel path.
    shape1 = (2, 4, 16, 16)
    o1 = jax.random.normal(k1, shape1, dtype=jnp.float32)
    t1 = (jax.random.uniform(k2, shape1) > 0.5).astype(jnp.float32)
    loss1 = jax.block_until_ready(contrastive_loss(o1, t1, margin=1.0))
    ref1 = _reference(o1, t1, margin=1.0)
    assert jnp.allclose(loss1, ref1, rtol=1e-4, atol=1e-6), (loss1, ref1)

    # Case 2: ragged input (555 elements) -> neutral-pad path, no in-kernel mask.
    shape2 = (3, 5, 37)
    o2 = jax.random.normal(k3, shape2, dtype=jnp.float32)
    t2 = (jax.random.uniform(k4, shape2) > 0.5).astype(jnp.float32)
    loss2 = jax.block_until_ready(contrastive_loss(o2, t2, margin=1.0))
    ref2 = _reference(o2, t2, margin=1.0)
    assert jnp.allclose(loss2, ref2, rtol=1e-4, atol=1e-6), (loss2, ref2)

    print("KERNEL_OK")
</pallas_src>

<mosaic_0001>
module attributes {stable_mosaic.version = 11 : i64} {
  func.func @_contrastive_loss_kernel(%arg0: i32, %arg1: i32, %arg2: memref<16x128xf32, #tpu.memory_space<vmem>>, %arg3: memref<16x128xf32, #tpu.memory_space<vmem>>, %arg4: memref<1x8x128xf32, #tpu.memory_space<vmem>>) attributes {dimension_semantics = [#tpu.dimension_semantics<parallel>, #tpu.dimension_semantics<arbitrary>], iteration_bounds = array<i64: 1, 1>, scalar_prefetch = 0 : i64, scratch_operands = 0 : i64, tpu.core_type = #tpu.core_type<tc>, window_params = [{transform_indices = @transform_0, window_bounds = array<i64: 16, 128>}, {transform_indices = @transform_1, window_bounds = array<i64: 16, 128>}, {transform_indices = @transform_2, window_bounds = array<i64: 1, 8, 128>}]} {
    %c0_i32 = arith.constant 0 : i32
    %0 = arith.cmpi eq, %arg1, %c0_i32 : i32
    %1 = arith.extui %0 : i1 to i32
    %c0_i32_0 = arith.constant 0 : i32
    %2 = arith.cmpi ne, %1, %c0_i32_0 : i32
    scf.if %2 {
      %cst_15 = arith.constant 0.000000e+00 : f32
      %29 = vector.broadcast %cst_15 : f32 to vector<8x128xf32>
      %c0_16 = arith.constant 0 : index
      %c0_17 = arith.constant 0 : index
      %c0_18 = arith.constant 0 : index
      %30 = vector.load %arg4[%c0_16, %c0_17, %c0_18] : memref<1x8x128xf32, #tpu.memory_space<vmem>>, vector<1x8x128xf32>
      %31 = vector.shape_cast %30 : vector<1x8x128xf32> to vector<8x128xf32>
      %32 = vector.shape_cast %29 : vector<8x128xf32> to vector<1x8x128xf32>
      tpu.vector_store %arg4[%c0_16, %c0_17, %c0_18], %32 {strides = array<i32>} : memref<1x8x128xf32, #tpu.memory_space<vmem>>, vector<1x8x128xf32>,
    } else {
    }
    %c0 = arith.constant 0 : index
    %c0_1 = arith.constant 0 : index
    %c0_2 = arith.constant 0 : index
    %3 = vector.load %arg4[%c0, %c0_1, %c0_2] : memref<1x8x128xf32, #tpu.memory_space<vmem>>, vector<1x8x128xf32>
    %4 = vector.shape_cast %3 : vector<1x8x128xf32> to vector<8x128xf32>
    %c0_3 = arith.constant 0 : index
    %c0_4 = arith.constant 0 : index
    %5 = vector.load %arg2[%c0_3, %c0_4] : memref<16x128xf32, #tpu.memory_space<vmem>>, vector<16x128xf32>
    %c0_5 = arith.constant 0 : index
    %c0_6 = arith.constant 0 : index
    %6 = vector.load %arg3[%c0_5, %c0_6] : memref<16x128xf32, #tpu.memory_space<vmem>>, vector<16x128xf32>
    %cst = arith.constant 5.000000e-01 : f32
    %7 = vector.broadcast %cst : f32 to vector<16x128xf32>
    %8 = arith.mulf %7, %5 : vector<16x128xf32>
    %9 = math.tanh %8 : vector<16x128xf32>
    %cst_7 = arith.constant 5.000000e-01 : f32
    %10 = vector.broadcast %cst_7 : f32 to vector<16x128xf32>
    %11 = arith.mulf %10, %9 : vector<16x128xf32>
    %cst_8 = arith.constant 5.000000e-01 : f32
    %12 = vector.broadcast %cst_8 : f32 to vector<16x128xf32>
    %13 = arith.addf %11, %12 : vector<16x128xf32>
    %cst_9 = arith.constant 1.000000e+00 : f32
    %14 = vector.broadcast %cst_9 : f32 to vector<16x128xf32>
    %15 = arith.subf %14, %13 : vector<16x128xf32>
    %cst_10 = arith.constant 0.000000e+00 : f32
    %16 = vector.broadcast %cst_10 : f32 to vector<16x128xf32>
    %17 = arith.maximumf %15, %16 : vector<16x128xf32>
    %18 = arith.mulf %17, %17 : vector<16x128xf32>
    %19 = arith.mulf %13, %13 : vector<16x128xf32>
    %20 = arith.subf %19, %18 : vector<16x128xf32>
    %21 = arith.mulf %6, %20 : vector<16x128xf32>
    %22 = arith.addf %18, %21 : vector<16x128xf32>
    %23 = vector.shape_cast %22 : vector<16x128xf32> to vector<2x8x128xf32>
    %cst_11 = arith.constant dense<0.000000e+00> : vector<8x128xf32>
    %24 = vector.multi_reduction <add>, %23, %cst_11 [0] : vector<2x8x128xf32> to vector<8x128xf32>
    %25 = arith.addf %4, %24 : vector<8x128xf32>
    %c0_12 = arith.constant 0 : index
    %c0_13 = arith.constant 0 : index
    %c0_14 = arith.constant 0 : index
    %26 = vector.load %arg4[%c0_12, %c0_13, %c0_14] : memref<1x8x128xf32, #tpu.memory_space<vmem>>, vector<1x8x128xf32>
    %27 = vector.shape_cast %26 : vector<1x8x128xf32> to vector<8x128xf32>
    %28 = vector.shape_cast %25 : vector<8x128xf32> to vector<1x8x128xf32>
    tpu.vector_store %arg4[%c0_12, %c0_13, %c0_14], %28 {strides = array<i32>} : memref<1x8x128xf32, #tpu.memory_space<vmem>>, vector<1x8x128xf32>,
    return
  }
  func.func @transform_0(%arg0: i32, %arg1: i32) -> (i32, i32) {
    %c1_i32 = arith.constant 1 : i32
    %0 = arith.muli %arg0, %c1_i32 : i32
    %1 = arith.addi %0, %arg1 : i32
    %c0_i32 = arith.constant 0 : i32
    %c0_i32_0 = arith.constant 0 : i32
    return %1, %c0_i32 : i32, i32
  }
  func.func @transform_1(%arg0: i32, %arg1: i32) -> (i32, i32) {
    %c1_i32 = arith.constant 1 : i32
    %0 = arith.muli %arg0, %c1_i32 : i32
    %1 = arith.addi %0, %arg1 : i32
    %c0_i32 = arith.constant 0 : i32
    %c0_i32_0 = arith.constant 0 : i32
    return %1, %c0_i32 : i32, i32
  }
  func.func @transform_2(%arg0: i32, %arg1: i32) -> (i32, i32, i32) {
    %c0_i32 = arith.constant 0 : i32
    %c0_i32_0 = arith.constant 0 : i32
    %c0_i32_1 = arith.constant 0 : i32
    return %arg0, %c0_i32, %c0_i32_0 : i32, i32, i32
  }
}

</mosaic_0001>

<bundles_post_ra>
// kernel: tpu_custom_call.1
= control target key start
LH: loop header
LB: loop body
LE: loop exit
PB: predicated region body
PF: predicated region fallthrough
CT: control target
= control target key end

     0   :  { %7 = vsyncpa [#allocation3], 0  ;;  %s241_s0 = inlined_call_operand.hbm [shape: f32[16,128], index: 0, kind: input, shape index: {}]   ;;  %s242_s1 = inlined_call_operand.hbm [shape: f32[16,128], index: 1, kind: input, shape index: {}]   ;;  %s243_s2 = inlined_call_operand.hbm [shape: f32[1,8,128], index: 2, kind: output, shape index: {}]  }
   0x1   :  { %8 = vsyncpa [#allocation6], 0 }
   0x2   :  { %9 = vsyncpa [#allocation4], 0  ;;  %s185_s9 = smov [#allocation2]   ;;  %s113_s13 = scalar_lea.hbm %s241_s0, 256 }
   0x3   :  { %s19_s10 = sshll.u32 %s185_s9, 4  ;;  %p114_p0 = scmp.ne.s32.totalorder %s241_s0, %s113_s13  ;;  %s20_s10 = int_to_ptr.vmem [resolvable:$true] %s19_s10 }
   0x4   :  { %p117_p1 = scmp.lt.u32.totalorder %s113_s13, %s241_s0 }
   0x6   :  { %p119_p2 = pnand %p117_p1, %p114_p0 }
   0x8   :  { %122 = shalt.err (!%p119_p2)
}
   0x9   :  { %s123_s18 = scalar_lea.vmem %s20_s10, 256  ;;  %p128_p4 = scmp.lt.s32.totalorder %s20_s10, %s20_s10 }
   0xa   :  { %p124_p3 = scmp.ne.s32.totalorder %s20_s10, %s123_s18  ;;  %p129_p5 = scmp.lt.s32.totalorder %s123_s18, %s123_s18 }
   0xc   :  { %p130_p6 = por %p129_p5, %p128_p4 }
   0xe   :  { %p131_p7 = pnand %p130_p6, %p124_p3 }
  0x10   :  { %134 = shalt.err (!%p131_p7)
}
  0x11   :  { %s186_s19 = smov 128   ;;  %s187_s20 = smov 8  }
  0x12   :  { %25 = dma.hbm_to_vmem [thread:$0]  %s241_s0, 256, %s20_s10, [#allocation3], %s186_s19, %s186_s19, %s187_s20  }
  0x13   :  { %s188_s23 = smov [#allocation5]   ;;  %s135_s27 = scalar_lea.hbm %s242_s1, 256 }
  0x14   :  { %s35_s24 = sshll.u32 %s188_s23, 4  ;;  %p136_p8 = scmp.ne.s32.totalorder %s242_s1, %s135_s27  ;;  %s36_s24 = int_to_ptr.vmem [resolvable:$true] %s35_s24 }
  0x15   :  { %p139_p9 = scmp.lt.u32.totalorder %s135_s27, %s242_s1 }
  0x17   :  { %p141_p10 = pnand %p139_p9, %p136_p8 }
  0x19   :  { %144 = shalt.err (!%p141_p10)
}
  0x1a   :  { %s145_s4 = scalar_lea.vmem %s36_s24, 256  ;;  %p150_p12 = scmp.lt.s32.totalorder %s36_s24, %s36_s24 }
  0x1b   :  { %p146_p11 = scmp.ne.s32.totalorder %s36_s24, %s145_s4  ;;  %p151_p13 = scmp.lt.s32.totalorder %s145_s4, %s145_s4 }
  0x1d   :  { %p152_p0 = por %p151_p13, %p150_p12 }
  0x1f   :  { %p153_p1 = pnand %p152_p0, %p146_p11 }
  0x21   :  { %156 = shalt.err (!%p153_p1)
}
  0x22   :  { %41 = dma.hbm_to_vmem [thread:$0]  %s242_s1, 256, %s36_s24, [#allocation6], %s186_s19, %s186_s19, %s187_s20  }
  0x23   :  { %179 = dma.done.wait [#allocation3], 256  }
  0x24   :  { %180 = vsyncadd [#allocation3], 4294967040 }
  0x25   :  { %181 = dma.done.wait [#allocation6], 256  }
  0x26   :  { %182 = vsyncadd [#allocation6], 4294967040  ;;  %v58_v0 = vld [vmem:[#allocation2] sm:$0xff]  ;;  %v59_v1 = vld [vmem:[#allocation2 + $0x8] sm:$0xff]  ;;  %s189_s1 = smov [#allocation7]  }
  0x27   :  { %v62_v2 = vmul.f32 0.5, %v58_v0  ;;  %v63_v3 = vmul.f32 0.5, %v59_v1  ;;  %v60_v17 = vld [vmem:[#allocation5] sm:$0xff]  ;;  %v61_v19 = vld [vmem:[#allocation5 + $0x8] sm:$0xff]  ;;  %s93_s6 = sshll.u32 %s189_s1, 4  ;;  %s94_s6 = int_to_ptr.vmem [resolvable:$true] %s93_s6 }
  0x28   :  { %s157_s7 = scalar_lea.vmem %s94_s6, 128  ;;  %p162_p3 = scmp.lt.s32.totalorder %s94_s6, %s94_s6 }
  0x29   :  { %109 = vtanh.f32 %v62_v2  ;;  %p158_p2 = scmp.ne.s32.totalorder %s94_s6, %s157_s7  ;;  %p163_p4 = scmp.lt.s32.totalorder %s157_s7, %s157_s7 }
  0x2a   :  { %111 = vtanh.f32 %v63_v3 }
  0x2b   :  { %p164_p5 = por %p163_p4, %p162_p3 }
  0x2d   :  { %p165_p6 = pnand %p164_p5, %p158_p2 }
  0x33   :  { %v110_v4 = vpop.eup %109 }
  0x34   :  { %v112_v5 = vpop.eup %111  ;;  %v66_v6 = vmul.f32 0.5, %v110_v4 }
  0x35   :  { %v67_v7 = vmul.f32 0.5, %v112_v5 }
  0x36   :  { %v68_v8 = vadd.f32 0.5, %v66_v6 }
  0x37   :  { %v69_v9 = vadd.f32 0.5, %v67_v7 }
  0x38   :  { %v70_v10 = vsub.f32 1.0, %v68_v8  ;;  %v76_v13 = vmul.f32 %v68_v8, %v68_v8 }
  0x39   :  { %v71_v11 = vsub.f32 1.0, %v69_v9  ;;  %v77_v15 = vmul.f32 %v69_v9, %v69_v9 }
  0x3a   :  { %v72_v12 = vmax.f32 %v70_v10, 0.0 }
  0x3b   :  { %v73_v14 = vmax.f32 %v71_v11, 0.0 }
  0x3c   :  { %v74_v16 = vmul.f32 %v72_v12, %v72_v12 }
  0x3d   :  { %v75_v18 = vmul.f32 %v73_v14, %v73_v14 }
  0x3e   :  { %v78_v20 = vsub.f32 %v76_v13, %v74_v16 }
  0x3f   :  { %v79_v21 = vsub.f32 %v77_v15, %v75_v18 }
  0x40   :  { %v80_v22 = vmul.f32 %v78_v20, %v60_v17 }
  0x41   :  { %v81_v23 = vmul.f32 %v79_v21, %v61_v19 }
  0x42   :  { %v82_v24 = vadd.f32 %v80_v22, %v74_v16 }
  0x43   :  { %v83_v25 = vadd.f32 %v81_v23, %v75_v18 }
  0x45   :  { %v84_v26 = vadd.f32 %v83_v25, %v82_v24 }
  0x47   :  { %86 = vst [vmem:[#allocation7] sm:$0xff] %v84_v26 }
  0x48   :  { %168 = shalt.err (!%p165_p6)
}
  0x49   :  { %s169_s10 = scalar_lea.hbm %s243_s2, 128 }
  0x4a   :  { %p170_p7 = scmp.ne.s32.totalorder %s243_s2, %s169_s10  ;;  %p173_p8 = scmp.lt.u32.totalorder %s169_s10, %s243_s2 }
  0x4c   :  { %p175_p9 = pnand %p173_p8, %p170_p7 }
  0x4e   :  { %178 = shalt.err (!%p175_p9)
}
  0x4f   :  { %96 = dma.vmem_to_hbm [thread:$0]  %s94_s6, 128, %s243_s2, [#allocation4]  }
  0x50   :  { %183 = dma.done.wait [#allocation4], 128  }
  0x51   :  { %184 = vsyncadd [#allocation4], 4294967168 }
  0x52   :  { %100 = vsyncpa [#allocation3], 1 }
  0x53   :  { %101 = vsyncpa [#allocation6], 1 }
  0x54   :  { %102 = vsyncpa [#allocation4], 1 }

</bundles_post_ra>
